<compile_context>
chip_gen: v6e
topology: v6e:2x2x1
jax: 0.10.0
libtpu: 0.0.40
codegen_flags: <defaults>
</compile_context>

<pallas_src>
import jax
import jax.numpy as jnp
from jax.experimental import pallas as pl
from jax.experimental.pallas import tpu as pltpu

LANE = 128     # lane width (last-dim alignment)
SUBLANE = 16   # bf16 sublane packing; also satisfies f32's 8


def _round_up(x, m):
    return (x + m - 1) // m * m


def _cdiv(a, b):
    return (a + b - 1) // b


def mlp_kernel(x_ref, w1_ref, b1_ref, w2_ref, b2_ref, o_ref):
    """Fused Linear -> ReLU -> Linear for one batch tile.

    x_ref:  (tile_b, d_in)      input dtype (pipelined tile, cast in-kernel)
    w1_ref: (d_in, hidden_p)    bf16  (whole-array resident in VMEM)
    b1_ref: (1, hidden_p)       f32   (resident)
    w2_ref: (hidden_p, d_out_p) bf16  (resident)
    b2_ref: (1, d_out_p)        f32   (resident)
    o_ref:  (tile_b, d_out_p)   f32
    """
    # Module casts to float32; bf16 is only the MXU operand dtype (f32 accumulate).
    x = x_ref[...].astype(jnp.bfloat16)
    # Linear 1 on the MXU (bf16 x bf16 -> f32).
    h = jnp.dot(x, w1_ref[...], preferred_element_type=jnp.float32)
    # Bias + ReLU + downcast as a single chain so only the bf16 h is kept
    # as the second matmul operand (no extra f32 h round-trip).
    h = jnp.maximum(h + b1_ref[...], 0.0).astype(jnp.bfloat16)
    # Linear 2 on the MXU, f32 accumulate, bias add, f32 store.
    o_ref[...] = (jnp.dot(h, w2_ref[...], preferred_element_type=jnp.float32)
                  + b2_ref[...])


def prepare_params(w1, b1, w2, b2):
    """Pad hidden/output dims to 128 lanes and cast weights to bf16 ONCE.

    d_in is left unpadded (the x block uses the full feature dim).  Zero
    padding is exact: padded hidden units are ReLU(0 + 0) = 0 and multiply
    zero rows of W2; padded output columns are sliced off after the kernel.
    """
    d_in, hidden = w1.shape
    hidden2, d_out = w2.shape
    assert hidden == hidden2
    hidden_p = _round_up(hidden, LANE)
    d_out_p = _round_up(d_out, LANE)

    w1_p = jnp.zeros((d_in, hidden_p), jnp.float32).at[:, :hidden].set(w1)
    w2_p = jnp.zeros((hidden_p, d_out_p), jnp.float32).at[:hidden, :d_out].set(w2)
    b1_p = jnp.zeros((1, hidden_p), jnp.float32).at[0, :hidden].set(b1)
    b2_p = jnp.zeros((1, d_out_p), jnp.float32).at[0, :d_out].set(b2)
    return {
        "w1": w1_p.astype(jnp.bfloat16),
        "b1": b1_p,
        "w2": w2_p.astype(jnp.bfloat16),
        "b2": b2_p,
        "d_out": d_out,
    }


def _vmem_capacity_bytes():
    """Generation-aware VMEM capacity (v5e/v6e: 128 MiB, v7x: 64 MiB)."""
    try:
        cap = getattr(pltpu.get_tpu_info(), "vmem_capacity_bytes", None)
        if cap:
            return int(cap)
    except Exception:
        pass
    return 64 * 1024 * 1024  # conservative fallback (v7x per-core)


def image_to_text_mapping(img_features, params, *, max_tile_b=1024):
    """Pallas implementation of ImageToTextMapping.forward.

    img_features: (B, img_feature_dim), any dtype (cast in-kernel).
    Returns (B, text_feature_dim) float32.
    """
    w1, b1, w2, b2 = params["w1"], params["b1"], params["w2"], params["b2"]
    d_out = params["d_out"]
    d_in, hidden_p = w1.shape
    d_out_p = w2.shape[1]
    B = img_features.shape[0]
    x_itemsize = jnp.dtype(img_features.dtype).itemsize

    # Deeper input pipelining only when the per-tile x DMA is large.
    x_bufs = 3 if d_in >= 2048 else 2

    def vmem_bytes(tb):
        weights = ((d_in * hidden_p + hidden_p * d_out_p) * 2
                   + (hidden_p + d_out_p) * 4)              # resident, single copy
        x_b = x_bufs * tb * d_in * x_itemsize                # pipelined input bufs
        o_b = 2 * tb * d_out_p * 4                           # pipelined output bufs
        inter = tb * hidden_p * (4 + 2)                      # f32 dot result + bf16 h
        return weights + x_b + o_b + inter

    vmem_cap = _vmem_capacity_bytes()
    budget = max(24 << 20, int(vmem_cap * 0.72))             # working-set cap

    # Largest batch tile that fits the budget (multiple of 16 rows).
    tile_cap = max(SUBLANE, _round_up(min(max_tile_b, max(B, 1)), SUBLANE))
    while tile_cap > SUBLANE and vmem_bytes(tile_cap) > budget:
        tile_cap = max(SUBLANE, _round_up(tile_cap // 2, SUBLANE))

    # Balance the grid: even step count (v7x shares the 'parallel' axis across
    # 2 TensorCores) and no mostly-padded last tile.
    if B <= tile_cap:
        if B > 2 * SUBLANE:
            tile_b = _round_up(_cdiv(B, 2), SUBLANE)          # 2 balanced steps
        else:
            tile_b = B                                        # single full block
    else:
        steps = _cdiv(B, tile_cap)
        if steps % 2:
            steps += 1
        tile_b = _round_up(_cdiv(B, steps), SUBLANE)
    grid = (_cdiv(B, tile_b),)

    need = vmem_bytes(tile_b)
    vmem_limit = int(min(max(need + (8 << 20), 16 << 20), int(vmem_cap * 0.85)))

    x_spec_kwargs = {}
    if x_bufs == 3:
        x_spec_kwargs = dict(pipeline_mode=pl.Buffered(3))

    flops = 2 * B * hidden_p * (d_in + d_out_p)
    bytes_accessed = (B * d_in * x_itemsize
                      + (d_in * hidden_p + hidden_p * d_out_p) * 2
                      + (hidden_p + d_out_p) * 4
                      + B * d_out_p * 4)

    out = pl.pallas_call(
        mlp_kernel,
        out_shape=jax.ShapeDtypeStruct((B, d_out_p), jnp.float32),
        grid_spec=pltpu.PrefetchScalarGridSpec(
            num_scalar_prefetch=0,
            grid=grid,
            in_specs=[
                # Only the batch tile is pipelined HBM<->VMEM.
                pl.BlockSpec((tile_b, d_in), lambda i: (i, 0), **x_spec_kwargs),
                # Weights / biases: whole-array resident in VMEM (copied once).
                pl.BlockSpec(memory_space=pltpu.MemorySpace.VMEM),  # W1
                pl.BlockSpec(memory_space=pltpu.MemorySpace.VMEM),  # b1
                pl.BlockSpec(memory_space=pltpu.MemorySpace.VMEM),  # W2
                pl.BlockSpec(memory_space=pltpu.MemorySpace.VMEM),  # b2
            ],
            out_specs=pl.BlockSpec((tile_b, d_out_p), lambda i: (i, 0)),
        ),
        compiler_params=pltpu.CompilerParams(
            dimension_semantics=("parallel",),
            vmem_limit_bytes=vmem_limit,
        ),
        cost_estimate=pl.CostEstimate(
            flops=int(flops),
            transcendentals=0,
            bytes_accessed=int(bytes_accessed),
        ),
    )(img_features, w1, b1, w2, b2)

    # Drop output-lane padding (no batch padding exists: out has exactly B rows).
    if d_out_p != d_out:
        out = out[:, :d_out]
    return out


def init_params(key, img_feature_dim, text_feature_dim, hidden=1024):
    """Deterministic parameter init (mimics torch.nn.Linear uniform init)."""
    k1, k2, k3, k4 = jax.random.split(key, 4)
    bound1 = 1.0 / jnp.sqrt(img_feature_dim)
    bound2 = 1.0 / jnp.sqrt(hidden)
    w1 = jax.random.uniform(k1, (img_feature_dim, hidden), jnp.float32,
                            minval=-bound1, maxval=bound1)
    b1 = jax.random.uniform(k2, (hidden,), jnp.float32,
                            minval=-bound1, maxval=bound1)
    w2 = jax.random.uniform(k3, (hidden, text_feature_dim), jnp.float32,
                            minval=-bound2, maxval=bound2)
    b2 = jax.random.uniform(k4, (text_feature_dim,), jnp.float32,
                            minval=-bound2, maxval=bound2)
    return w1, b1, w2, b2


if __name__ == "__main__":
    key = jax.random.PRNGKey(0)
    k_param, k_x = jax.random.split(key)

    batch = 8
    img_feature_dim = 32
    text_feature_dim = 64

    w1, b1, w2, b2 = init_params(k_param, img_feature_dim, text_feature_dim)
    x = jax.random.normal(k_x, (batch, img_feature_dim), jnp.float32)

    params = prepare_params(w1, b1, w2, b2)
    out = image_to_text_mapping(x, params)
    out = jax.block_until_ready(out)
    assert out.shape == (batch, text_feature_dim)

    # Reference with the SAME bf16-operand / f32-accumulate math as the kernel.
    x_bf = x.astype(jnp.bfloat16)
    h_ref = jnp.dot(x_bf, w1.astype(jnp.bfloat16),
                    preferred_element_type=jnp.float32) + b1
    h_ref = jnp.maximum(h_ref, 0.0).astype(jnp.bfloat16)
    ref_bf = jnp.dot(h_ref, w2.astype(jnp.bfloat16),
                     preferred_element_type=jnp.float32) + b2
    assert jnp.allclose(out, ref_bf, atol=1e-2, rtol=1e-2), \
        float(jnp.max(jnp.abs(out - ref_bf)))

    # Looser check against the pure-f32 PyTorch-equivalent math (bf16 rounding).
    ref_f32 = jnp.maximum(x @ w1 + b1, 0.0) @ w2 + b2
    assert jnp.allclose(out, ref_f32, atol=5e-2, rtol=5e-2)

    print("KERNEL_OK")
</pallas_src>

<mosaic_0001>
module attributes {stable_mosaic.version = 11 : i64} {
  func.func @mlp_kernel(%arg0: i32, %arg1: memref<8x32xf32, #tpu.memory_space<vmem>>, %arg2: memref<32x1024xbf16, #tpu.memory_space<vmem>>, %arg3: memref<1x1024xf32, #tpu.memory_space<vmem>>, %arg4: memref<1024x128xbf16, #tpu.memory_space<vmem>>, %arg5: memref<1x128xf32, #tpu.memory_space<vmem>>, %arg6: memref<8x128xf32, #tpu.memory_space<vmem>>) attributes {dimension_semantics = [#tpu.dimension_semantics<parallel>], iteration_bounds = array<i64: 1>, scalar_prefetch = 0 : i64, scratch_operands = 0 : i64, tpu.core_type = #tpu.core_type<tc>, window_params = [{transform_indices = @transform_0, window_bounds = array<i64: 8, 32>}, {pipeline_mode = #tpu.pipeline_mode<synchronous>, transform_indices = @transform_1, window_bounds = array<i64: 32, 1024>}, {pipeline_mode = #tpu.pipeline_mode<synchronous>, transform_indices = @transform_2, window_bounds = array<i64: 1, 1024>}, {pipeline_mode = #tpu.pipeline_mode<synchronous>, transform_indices = @transform_3, window_bounds = array<i64: 1024, 128>}, {pipeline_mode = #tpu.pipeline_mode<synchronous>, transform_indices = @transform_4, window_bounds = array<i64: 1, 128>}, {transform_indices = @transform_5, window_bounds = array<i64: 8, 128>}]} {
    %c0 = arith.constant 0 : index
    %c0_0 = arith.constant 0 : index
    %0 = vector.load %arg1[%c0, %c0_0] : memref<8x32xf32, #tpu.memory_space<vmem>>, vector<8x32xf32>
    %1 = arith.truncf %0 : vector<8x32xf32> to vector<8x32xbf16>
    %c0_1 = arith.constant 0 : index
    %c0_2 = arith.constant 0 : index
    %2 = vector.load %arg2[%c0_1, %c0_2] : memref<32x1024xbf16, #tpu.memory_space<vmem>>, vector<32x1024xbf16>
    %cst = arith.constant dense<0.000000e+00> : vector<8x1024xf32>
    %3 = tpu.matmul %1, %2, %cst {dimension_numbers = #tpu.dot_dimension_numbers<[1], [0], [0], [1], [0, 0, 1, 1], [], []>} : vector<8x32xbf16>, vector<32x1024xbf16>, vector<8x1024xf32> -> vector<8x1024xf32>
    %c0_3 = arith.constant 0 : index
    %c0_4 = arith.constant 0 : index
    %4 = vector.load %arg3[%c0_3, %c0_4] : memref<1x1024xf32, #tpu.memory_space<vmem>>, vector<1x1024xf32>
    %5 = vector.broadcast %4 : vector<1x1024xf32> to vector<8x1024xf32>
    %6 = arith.addf %3, %5 : vector<8x1024xf32>
    %cst_5 = arith.constant 0.000000e+00 : f32
    %7 = vector.broadcast %cst_5 : f32 to vector<8x1024xf32>
    %8 = arith.maximumf %6, %7 : vector<8x1024xf32>
    %9 = arith.truncf %8 : vector<8x1024xf32> to vector<8x1024xbf16>
    %c0_6 = arith.constant 0 : index
    %c0_7 = arith.constant 0 : index
    %10 = vector.load %arg4[%c0_6, %c0_7] : memref<1024x128xbf16, #tpu.memory_space<vmem>>, vector<1024x128xbf16>
    %cst_8 = arith.constant dense<0.000000e+00> : vector<8x128xf32>
    %11 = tpu.matmul %9, %10, %cst_8 {dimension_numbers = #tpu.dot_dimension_numbers<[1], [0], [0], [1], [0, 0, 1, 1], [], []>} : vector<8x1024xbf16>, vector<1024x128xbf16>, vector<8x128xf32> -> vector<8x128xf32>
    %c0_9 = arith.constant 0 : index
    %c0_10 = arith.constant 0 : index
    %12 = vector.load %arg5[%c0_9, %c0_10] : memref<1x128xf32, #tpu.memory_space<vmem>>, vector<1x128xf32>
    %13 = vector.broadcast %12 : vector<1x128xf32> to vector<8x128xf32>
    %14 = arith.addf %11, %13 : vector<8x128xf32>
    %c0_11 = arith.constant 0 : index
    %c0_12 = arith.constant 0 : index
    %15 = vector.load %arg6[%c0_11, %c0_12] : memref<8x128xf32, #tpu.memory_space<vmem>>, vector<8x128xf32>
    tpu.vector_store %arg6[%c0_11, %c0_12], %14 {strides = array<i32>} : memref<8x128xf32, #tpu.memory_space<vmem>>, vector<8x128xf32>,
    return
  }
  func.func @transform_0(%arg0: i32) -> (i32, i32) {
    %c0_i32 = arith.constant 0 : i32
    %c0_i32_0 = arith.constant 0 : i32
    return %arg0, %c0_i32 : i32, i32
  }
  func.func @transform_1(%arg0: i32) -> (i32, i32) {
    %c0_i32 = arith.constant 0 : i32
    %c0_i32_0 = arith.constant 0 : i32
    %c0_i32_1 = arith.constant 0 : i32
    return %c0_i32, %c0_i32_0 : i32, i32
  }
  func.func @transform_2(%arg0: i32) -> (i32, i32) {
    %c0_i32 = arith.constant 0 : i32
    %c0_i32_0 = arith.constant 0 : i32
    %c0_i32_1 = arith.constant 0 : i32
    return %c0_i32, %c0_i32_0 : i32, i32
  }
  func.func @transform_3(%arg0: i32) -> (i32, i32) {
    %c0_i32 = arith.constant 0 : i32
    %c0_i32_0 = arith.constant 0 : i32
    %c0_i32_1 = arith.constant 0 : i32
    return %c0_i32, %c0_i32_0 : i32, i32
  }
  func.func @transform_4(%arg0: i32) -> (i32, i32) {
    %c0_i32 = arith.constant 0 : i32
    %c0_i32_0 = arith.constant 0 : i32
    %c0_i32_1 = arith.constant 0 : i32
    return %c0_i32, %c0_i32_0 : i32, i32
  }
  func.func @transform_5(%arg0: i32) -> (i32, i32) {
    %c0_i32 = arith.constant 0 : i32
    %c0_i32_0 = arith.constant 0 : i32
    return %arg0, %c0_i32 : i32, i32
  }
}

</mosaic_0001>

<bundles_post_ra>
// kernel: tpu_custom_call.1
= control target key start
LH: loop header
LB: loop body
LE: loop exit
PB: predicated region body
PF: predicated region fallthrough
CT: control target
= control target key end

     0   :  { %10 = vsyncpa [#allocation3], 0  ;;  %s1534_s0 = inlined_call_operand.hbm [shape: f32[8,32], index: 0, kind: input, shape index: {}]   ;;  %s1535_s1 = inlined_call_operand.hbm [shape: bf16[32,1024], index: 1, kind: input, shape index: {}]   ;;  %s1536_s2 = inlined_call_operand.hbm [shape: f32[1,1024], index: 2, kind: input, shape index: {}]   ;;  %s1537_s3 = inlined_call_operand.hbm [shape: bf16[1024,128], index: 3, kind: input, shape index: {}]   ;;  %s1538_s4 = inlined_call_operand.vmem [shape: f32[1,128], index: 4, kind: input, shape index: {}]   ;;  %s1539_s5 = inlined_call_operand.hbm [shape: f32[8,128], index: 5, kind: output, shape index: {}]  }
   0x1   :  { %11 = vsyncpa [#allocation6], 0 }
   0x2   :  { %12 = vsyncpa [#allocation9], 0 }
   0x3   :  { %13 = vsyncpa [#allocation4], 0  ;;  %s1449_s18 = smov [#allocation5]  }
   0x4   :  { %s29_s19 = sshll.u32 %s1449_s18, 4  ;;  %s30_s19 = int_to_ptr.vmem [resolvable:$true] %s29_s19 }
   0x5   :  { %s1349_s20 = scalar_lea.vmem %s30_s19, 2048  ;;  %p1354_p1 = scmp.lt.s32.totalorder %s30_s19, %s30_s19 }
   0x6   :  { %p1350_p0 = scmp.ne.s32.totalorder %s30_s19, %s1349_s20  ;;  %p1355_p2 = scmp.lt.s32.totalorder %s1349_s20, %s1349_s20 }
   0x8   :  { %p1356_p3 = por %p1355_p2, %p1354_p1 }
   0xa   :  { %p1357_p4 = pnand %p1356_p3, %p1350_p0 }
   0xc   :  { %1360 = shalt.err (!%p1357_p4)
}
   0xd   :  { %s1450_s21 = smov 512   ;;  %s1451_s22 = smov 32  }
   0xe   :  { %35 = dma.hbm_to_vmem [thread:$0]  %s1535_s1, 2048, %s30_s19, [#allocation6], %s1450_s21, %s1450_s21, %s1451_s22  }
   0xf   :  { %s1452_s25 = smov [#allocation2]   ;;  %s1453_s27 = smov [#allocation7]  }
  0x10   :  { %s20_s26 = sshll.u32 %s1452_s25, 4  ;;  %s42_s28 = sshll.u32 %s1453_s27, 4  ;;  %s21_s26 = int_to_ptr.vmem [resolvable:$true] %s20_s26  ;;  %s43_s28 = int_to_ptr.vmem [resolvable:$true] %s42_s28 }
  0x11   :  { %s1369_s29 = scalar_lea.vmem %s21_s26, 128  ;;  %p1374_p6 = scmp.lt.s32.totalorder %s21_s26, %s21_s26 }
  0x12   :  { %p1370_p5 = scmp.ne.s32.totalorder %s21_s26, %s1369_s29  ;;  %p1375_p7 = scmp.lt.s32.totalorder %s1369_s29, %s1369_s29 }
  0x14   :  { %p1376_p8 = por %p1375_p7, %p1374_p6 }
  0x16   :  { %p1377_p9 = pnand %p1376_p8, %p1370_p5 }
  0x18   :  { %1380 = shalt.err (!%p1377_p9)
}
  0x19   :  { %23 = dma.hbm_to_vmem [thread:$0]  %s1534_s0, 128, %s21_s26, [#allocation3]  }
  0x1a   :  { %s1389_s7 = scalar_lea.vmem %s43_s28, 128  ;;  %p1394_p11 = scmp.lt.s32.totalorder %s43_s28, %s43_s28 }
  0x1b   :  { %p1390_p10 = scmp.ne.s32.totalorder %s43_s28, %s1389_s7  ;;  %p1395_p12 = scmp.lt.s32.totalorder %s1389_s7, %s1389_s7 }
  0x1d   :  { %p1396_p13 = por %p1395_p12, %p1394_p11 }
  0x1f   :  { %p1397_p0 = pnand %p1396_p13, %p1390_p10 }
  0x21   :  { %1400 = shalt.err (!%p1397_p0)
}
  0x22   :  { %45 = dma.hbm_to_vmem [thread:$0]  %s1536_s2, 128, %s43_s28, [#allocation6]  }
  0x23   :  { %s1454_s9 = smov [#allocation8]  }
  0x24   :  { %s51_s10 = sshll.u32 %s1454_s9, 4  ;;  %s52_s10 = int_to_ptr.vmem [resolvable:$true] %s51_s10 }
  0x25   :  { %s1409_s11 = scalar_lea.vmem %s52_s10, 8192  ;;  %p1414_p2 = scmp.lt.s32.totalorder %s52_s10, %s52_s10 }
  0x26   :  { %p1410_p1 = scmp.ne.s32.totalorder %s52_s10, %s1409_s11  ;;  %p1415_p3 = scmp.lt.s32.totalorder %s1409_s11, %s1409_s11 }
  0x28   :  { %p1416_p4 = por %p1415_p3, %p1414_p2 }
  0x2a   :  { %p1417_p5 = pnand %p1416_p4, %p1410_p1 }
  0x2c   :  { %1420 = shalt.err (!%p1417_p5)
}
  0x2d   :  { %s1455_s0 = smov 64   ;;  %s1456_s12 = smov 4  }
  0x2e   :  { %57 = dma.hbm_to_vmem [thread:$0]  %s1537_s3, 8192, %s52_s10, [#allocation9], %s1455_s0, %s1455_s0, %s1456_s12  }
  0x2f   :  { %1441 = dma.done.wait [#allocation3], 128  }
  0x30   :  { %1442 = vsyncadd [#allocation3], 4294967168 }
  0x31   :  { %1443 = dma.done.wait [#allocation6], 2176  }
  0x32   :  { %1444 = vsyncadd [#allocation6], 4294965120 }
  0x33   :  { %1445 = dma.done.wait [#allocation9], 8192  }
  0x34   :  { %1446 = vsyncadd [#allocation9], 4294959104  ;;  %v1457_v0 = vmov 0   ;;  %v83_v1 = vld [vmem:[#allocation5 + $0x40] sm:$0xff]  ;;  %v84_v3 = vld [vmem:[#allocation5 + $0x48] sm:$0xff]  ;;  %vm213_vm0 = vcmask 261120  }
  0x35   :  { %249 = vmatprep.mubr.bf16.mxu0 %v1457_v0  ;;  %290 = vmatprep.mubr.bf16.mxu1 %v1457_v0  ;;  %v87_v2 = vld [vmem:[#allocation5 + $0x60] sm:$0xff]  ;;  %v88_v5 = vld [vmem:[#allocation5 + $0x68] sm:$0xff]  ;;  %v85_v15 = vld [vmem:[#allocation5 + $0x50] sm:$0xff]  ;;  %s1458_s15 = smov [#allocation10]  }
  0x36   :  { %v1103_v4 = vcombine.high %v83_v1, %v87_v2  ;;  %v1102_v6 = vcombine.low %v83_v1, %v87_v2  ;;  %v75_v7 = vld [vmem:[#allocation5] sm:$0xff]  ;;  %v1105_v9 = vcombine.high %v84_v3, %v88_v5  ;;  %v1104_v10 = vcombine.low %v84_v3, %v88_v5  ;;  %v76_v12 = vld [vmem:[#allocation5 + $0x8] sm:$0xff]  ;;  %v89_v16 = vld [vmem:[#allocation5 + $0x70] sm:$0xff]  ;;  %s1083_s16 = sshll.u32 %s1458_s15, 4  ;;  %s1084_s16 = int_to_ptr.vmem [resolvable:$true] %s1083_s16 }
  0x37   :  { %v79_v8 = vld [vmem:[#allocation5 + $0x20] sm:$0xff]  ;;  %v80_v13 = vld [vmem:[#allocation5 + $0x28] sm:$0xff]  ;;  %v86_v17 = vld [vmem:[#allocation5 + $0x58] sm:$0xff]  ;;  %v1107_v22 = vcombine.high %v85_v15, %v89_v16  ;;  %v1106_v29 = vcombine.low %v85_v15, %v89_v16  ;;  %v93_v5 = vlaneseq  ;;  %p1426_p7 = scmp.lt.s32.totalorder %s1084_s16, %s1084_s16 }
  0x38   :  { %v1095_v11 = vcombine.high %v75_v7, %v79_v8  ;;  %229 = vmatprep.subr.bf16.mxu0 %v1103_v4  ;;  %v1097_v14 = vcombine.high %v76_v12, %v80_v13  ;;  %270 = vmatprep.subr.bf16.mxu1 %v1105_v9  ;;  %v1094_v18 = vcombine.low %v75_v7, %v79_v8  ;;  %v73_v19 = vld [vmem:[#allocation2] sm:$0xff]  ;;  %v77_v23 = vld [vmem:[#allocation5 + $0x10] sm:$0xff]  ;;  %v1277_v35 = vld [vmem:[#allocation8 + $0x78] sm:$0xff]  }
  0x39   :  { %230 = vmatpush1.bf16.msra.mxu0 %v1102_v6  ;;  %v90_v20 = vld [vmem:[#allocation5 + $0x78] sm:$0xff]  ;;  %271 = vmatpush1.bf16.msra.mxu1 %v1104_v10  ;;  %v1096_v21 = vcombine.low %v76_v12, %v80_v13  ;;  %v81_v24 = vld [vmem:[#allocation5 + $0x30] sm:$0xff]  ;;  %v74_v27 = vpack.c.bf16 %v73_v19, %v73_v19  ;;  %v1278_v36 = vld [vmem:[#allocation8 + $0xf8] sm:$0xff]   ;;  %v1505_v6 = vshrl.u32 %v93_v5, 7 }
  0x3a   :  { %231 = vmatprep.subr.bf16.mxu0 %v1095_v11  ;;  %272 = vmatprep.subr.bf16.mxu1 %v1097_v14  ;;  %v1109_v25 = vcombine.high %v86_v17, %v90_v20  ;;  %v78_v26 = vld [vmem:[#allocation5 + $0x18] sm:$0xff]  ;;  %v1108_v30 = vcombine.low %v86_v17, %v90_v20  ;;  %v1099_v31 = vcombine.high %v77_v23, %v81_v24  ;;  %v1279_v37 = vld [vmem:[#allocation8 + $0x38] sm:$0xff]   ;;  %v1285_v43 = vld [vmem:[#allocation8 + $0x68] sm:$0xff]  }
  0x3b   :  { %v82_v28 = vld [vmem:[#allocation5 + $0x38] sm:$0xff]  ;;  %v1098_v33 = vcombine.low %v77_v23, %v81_v24  ;;  %v1280_v38 = vld [vmem:[#allocation8 + $0xb8] sm:$0xff]   ;;  %v1286_v44 = vld [vmem:[#allocation8 + $0xe8] sm:$0xff]   ;;  %v95_v7 = vsub.s32 0, %v1505_v6  ;;  %v103_v9 = vsub.s32 2, %v1505_v6  ;;  %v99_v10 = vsub.s32 1, %v1505_v6 }
  0x3c   :  { %v1101_v32 = vcombine.high %v78_v26, %v82_v28  ;;  %v1100_v34 = vcombine.low %v78_v26, %v82_v28  ;;  %v1281_v39 = vld [vmem:[#allocation8 + $0x70] sm:$0xff]   ;;  %v1287_v45 = vld [vmem:[#allocation8 + $0x28] sm:$0xff]   ;;  %v1289_v47 = vld [vmem:[#allocation8 + $0x60] sm:$0xff]   ;;  %v107_v11 = vsub.s32 3, %v1505_v6  ;;  %v115_v23 = vsub.s32 5, %v1505_v6 }
  0x3d   :  { %232 = vmatpush1.bf16.msra.mxu0 %v1094_v18  ;;  %273 = vmatpush1.bf16.msra.mxu1 %v1096_v21  ;;  %v1282_v40 = vld [vmem:[#allocation8 + $0xf0] sm:$0xff]   ;;  %v1288_v46 = vld [vmem:[#allocation8 + $0xa8] sm:$0xff]   ;;  %v1290_v48 = vld [vmem:[#allocation8 + $0xe0] sm:$0xff]   ;;  %v123_v28 = vsub.s32 7, %v1505_v6 }
  0x3e   :  { %311 = vmatprep.subr.bf16.mxu0 %v1107_v22  ;;  %352 = vmatprep.subr.bf16.mxu1 %v1109_v25  ;;  %v1283_v41 = vld [vmem:[#allocation8 + $0x30] sm:$0xff]   ;;  %v1291_v49 = vld [vmem:[#allocation8 + $0x20] sm:$0xff]   ;;  %v1293_v51 = vld [vmem:[#allocation8 + $0x58] sm:$0xff]  }
  0x3f   :  { %v1284_v42 = vld [vmem:[#allocation8 + $0xb0] sm:$0xff]   ;;  %v1292_v50 = vld [vmem:[#allocation8 + $0xa0] sm:$0xff]   ;;  %v1294_v52 = vld [vmem:[#allocation8 + $0xd8] sm:$0xff]  }
  0x40   :  { %1110 = vmatmul.mubr.msk.bf16.vlgmr.msra.gmra.mxu0 %vm213_vm0, %v74_v27  ;;  %1111 = vmatmul.mubr.msk.bf16.vlgmr.msra.gmra.mxu1 %vm213_vm0, %v74_v27  ;;  %v1295_v53 = vld [vmem:[#allocation8 + $0x18] sm:$0xff]   ;;  %v1297_v55 = vld [vmem:[#allocation8 + $0x50] sm:$0xff]   ;;  %v1301_v59 = vld [vmem:[#allocation8 + $0x48] sm:$0xff]  }
  0x41   :  { %312 = vmatpush1.bf16.msra.mxu0 %v1106_v29  ;;  %353 = vmatpush1.bf16.msra.mxu1 %v1108_v30  ;;  %v1296_v54 = vld [vmem:[#allocation8 + $0x98] sm:$0xff]   ;;  %v1298_v56 = vld [vmem:[#allocation8 + $0xd0] sm:$0xff]   ;;  %v1302_v60 = vld [vmem:[#allocation8 + $0xc8] sm:$0xff]  }
  0x42   :  { %313 = vmatprep.subr.bf16.mxu0 %v1099_v31  ;;  %354 = vmatprep.subr.bf16.mxu1 %v1101_v32  ;;  %v1299_v57 = vld [vmem:[#allocation8 + $0x10] sm:$0xff]   ;;  %v1303_v61 = vld [vmem:[#allocation8 + $0x8] sm:$0xff]   ;;  %v1305_v63 = vld [vmem:[#allocation8 + $0x40] sm:$0xff]  }
  0x43   :  { %331 = vmatprep.mubr.bf16.mxu0 %v1457_v0  ;;  %372 = vmatprep.mubr.bf16.mxu1 %v1457_v0  ;;  %v1300_v58 = vld [vmem:[#allocation8 + $0x90] sm:$0xff]   ;;  %v1304_v62 = vld [vmem:[#allocation8 + $0x88] sm:$0xff]   ;;  %v1306_v0 = vld [vmem:[#allocation8 + $0xc0] sm:$0xff]  }
  0x44   :  { %v1307_v1 = vld [vmem:[#allocation8] sm:$0xff]   ;;  %v1309_v3 = vld [vmem:[#allocation8 + $0x178] sm:$0xff]  }
  0x45   :  { %314 = vmatpush1.bf16.msra.mxu0 %v1098_v33  ;;  %355 = vmatpush1.bf16.msra.mxu1 %v1100_v34  ;;  %v1308_v2 = vld [vmem:[#allocation8 + $0x80] sm:$0xff]   ;;  %v1310_v4 = vld [vmem:[#allocation8 + $0x1f8] sm:$0xff]  }
  0x46   :  { %1179 = vmatprep.subr.bf16.mxu0 %v1277_v35  ;;  %1201 = vmatprep.subr.bf16.mxu1 %v1278_v36  ;;  %v1508_v8 = vld [vmem:[#allocation7] sm:$0xff] }
  0x47   :  { %v96_v12 = vrot.slane %v1508_v8, %v95_v7  ;;  %v104_v13 = vrot.slane %v1508_v8, %v103_v9  ;;  %v100_v14 = vrot.slane %v1508_v8, %v99_v10  ;;  %v108_v16 = vrot.slane %v1508_v8, %v107_v11  ;;  %v1311_v36 = vld [vmem:[#allocation8 + $0x138] sm:$0xff]  }
  0x48   :  { %1112 = vmatmul.mubr.msk.bf16.vlgmr.msra.gmra.mxu0 %vm213_vm0, %v74_v27  ;;  %1113 = vmatmul.mubr.msk.bf16.vlgmr.msra.gmra.mxu1 %vm213_vm0, %v74_v27  ;;  %v1326_v5 = vld [vmem:[#allocation8 + $0x1d8] sm:$0xff]   ;;  %v119_v9 = vsub.s32 6, %v1505_v6  ;;  %v111_v10 = vsub.s32 4, %v1505_v6  ;;  %v1335_v6 = vld [vmem:[#allocation8 + $0x108] sm:$0xff]  }
  0x49   :  { %1180 = vmatpush3.bf16.msra.mxu0 %v1279_v37  ;;  %1202 = vmatpush3.bf16.msra.mxu1 %v1280_v38  ;;  %v116_v37 = vrot.slane %v1508_v8, %v115_v23  ;;  %v1327_v7 = vld [vmem:[#allocation8 + $0x118] sm:$0xff]   ;;  %v1337_v23 = vld [vmem:[#allocation8 + $0x140] sm:$0xff]  }
  0x4a   :  { %1181 = vmatprep.subr.bf16.mxu0 %v1281_v39  ;;  %1203 = vmatprep.subr.bf16.mxu1 %v1282_v40  ;;  %v1312_v40 = vld [vmem:[#allocation8 + $0x1b8] sm:$0xff]  }
  0x4b   :  { %v1328_v11 = vld [vmem:[#allocation8 + $0x198] sm:$0xff]  }
  0x4d   :  { %1182 = vmatpush3.bf16.msra.mxu0 %v1283_v41  ;;  %1204 = vmatpush3.bf16.msra.mxu1 %v1284_v42  ;;  %v1313_v41 = vld [vmem:[#allocation8 + $0x170] sm:$0xff]  }
  0x4e   :  { %1183 = vmatprep.subr.bf16.mxu0 %v1285_v43  ;;  %1205 = vmatprep.subr.bf16.mxu1 %v1286_v44  ;;  %v124_v43 = vrot.slane %v1508_v8, %v123_v28  ;;  %v1314_v44 = vld [vmem:[#allocation8 + $0x1f0] sm:$0xff]  }
  0x51   :  { %1184 = vmatpush3.bf16.msra.mxu0 %v1287_v45  ;;  %1206 = vmatpush3.bf16.msra.mxu1 %v1288_v46 }
  0x52   :  { %1185 = vmatprep.subr.bf16.mxu0 %v1289_v47  ;;  %1207 = vmatprep.subr.bf16.mxu1 %v1290_v48  ;;  %v1315_v47 = vld [vmem:[#allocation8 + $0x130] sm:$0xff]  }
  0x55   :  { %1186 = vmatpush3.bf16.msra.mxu0 %v1291_v49  ;;  %1208 = vmatpush3.bf16.msra.mxu1 %v1292_v50  ;;  %v1316_v50 = vld [vmem:[#allocation8 + $0x1b0] sm:$0xff]  }
  0x56   :  { %1187 = vmatprep.subr.bf16.mxu0 %v1293_v51  ;;  %1209 = vmatprep.subr.bf16.mxu1 %v1294_v52  ;;  %v1317_v51 = vld [vmem:[#allocation8 + $0x168] sm:$0xff]  }
  0x59   :  { %1188 = vmatpush3.bf16.msra.mxu0 %v1295_v53  ;;  %1210 = vmatpush3.bf16.msra.mxu1 %v1296_v54  ;;  %v1318_v54 = vld [vmem:[#allocation8 + $0x1e8] sm:$0xff]  }
  0x5a   :  { %1189 = vmatprep.subr.bf16.mxu0 %v1297_v55  ;;  %1211 = vmatprep.subr.bf16.mxu1 %v1298_v56 }
  0x5d   :  { %1190 = vmatpush3.bf16.msra.mxu0 %v1299_v57  ;;  %1212 = vmatpush3.bf16.msra.mxu1 %v1300_v58 }
  0x5e   :  { %1191 = vmatprep.subr.bf16.mxu0 %v1301_v59  ;;  %1213 = vmatprep.subr.bf16.mxu1 %v1302_v60  ;;  %v1319_v59 = vld [vmem:[#allocation8 + $0x128] sm:$0xff]  }
  0x61   :  { %1192 = vmatpush3.bf16.msra.mxu0 %v1303_v61  ;;  %1214 = vmatpush3.bf16.msra.mxu1 %v1304_v62  ;;  %v1320_v62 = vld [vmem:[#allocation8 + $0x1a8] sm:$0xff]  }
  0x62   :  { %1193 = vmatprep.subr.bf16.mxu0 %v1305_v63  ;;  %1215 = vmatprep.subr.bf16.mxu1 %v1306_v0  ;;  %v1321_v63 = vld [vmem:[#allocation8 + $0x160] sm:$0xff]  }
  0x65   :  { %1194 = vmatpush3.bf16.msra.mxu0 %v1307_v1  ;;  %1216 = vmatpush3.bf16.msra.mxu1 %v1308_v2  ;;  %v1322_v1 = vld [vmem:[#allocation8 + $0x1e0] sm:$0xff]  }
  0x66   :  { %1223 = vmatprep.subr.bf16.mxu0 %v1309_v3  ;;  %1245 = vmatprep.subr.bf16.mxu1 %v1310_v4  ;;  %v1323_v2 = vld [vmem:[#allocation8 + $0x120] sm:$0xff]   ;;  %v1325_v4 = vld [vmem:[#allocation8 + $0x158] sm:$0xff]  }
  0x67   :  { %v1324_v3 = vld [vmem:[#allocation8 + $0x1a0] sm:$0xff]  }
 0x100   :  { %v251_v15 = vpop.f32.mrf.mxu0  ;;  %v292_v18 = vpop.f32.mrf.mxu1 }
 0x101   :  { %v252_v17 = vadd.f32 %v251_v15, %v96_v12  ;;  %v293_v19 = vadd.f32 %v292_v18, %v104_v13  ;;  %v1329_v12 = vld [vmem:[#allocation8 + $0x150] sm:$0xff]   ;;  %v1333_v18 = vld [vmem:[#allocation8 + $0x148] sm:$0xff]  }
 0x102   :  { %v253_v20 = vpop.f32.mrf.mxu0  ;;  %v294_v22 = vpop.f32.mrf.mxu1  ;;  %v1330_v13 = vld [vmem:[#allocation8 + $0x1d0] sm:$0xff]  }
 0x103   :  { %v254_v21 = vadd.f32 %v253_v20, %v100_v14  ;;  %v381_v24 = vmax.f32 %v252_v17, 0.0  ;;  %v383_v25 = vmax.f32 %v293_v19, 0.0  ;;  %v295_v26 = vadd.f32 %v294_v22, %v108_v16  ;;  %v1331_v15 = vld [vmem:[#allocation8 + $0x110] sm:$0xff]   ;;  %v1334_v19 = vld [vmem:[#allocation8 + $0x1c8] sm:$0xff]  }
 0x104   :  { %v255_v27 = vpop.f32.mrf.mxu0  ;;  %v296_v30 = vpop.f32.mrf.mxu1  ;;  %v120_v14 = vrot.slane %v1508_v8, %v119_v9  ;;  %v112_v16 = vrot.slane %v1508_v8, %v111_v10  ;;  %v1332_v17 = vld [vmem:[#allocation8 + $0x190] sm:$0xff]   ;;  %v1336_v22 = vld [vmem:[#allocation8 + $0x188] sm:$0xff]   ;;  %v1339_v8 = vld [vmem:[#allocation8 + $0x100] sm:$0xff]  }
 0x105   :  { %v382_v29 = vmax.f32 %v254_v21, 0.0  ;;  %v384_v31 = vmax.f32 %v295_v26, 0.0  ;;  %v391_v33 = vpack.c.bf16 %v383_v25, %v383_v25  ;;  %v389_v38 = vpack.c.bf16 %v381_v24, %v381_v24  ;;  %v1338_v24 = vld [vmem:[#allocation8 + $0x1c0] sm:$0xff]  }
 0x106   :  { %v256_v32 = vpop.f32.mrf.mxu0  ;;  %v297_v35 = vpop.f32.mrf.mxu1  ;;  %v1340_v27 = vld [vmem:[#allocation8 + $0x180] sm:$0xff]  }
 0x107   :  { %v390_v34 = vpack.c.bf16 %v382_v29, %v382_v29  ;;  %v392_v39 = vpack.c.bf16 %v384_v31, %v384_v31 }
 0x108   :  { %v1520_v42 = vpop.f32.mrf.mxu0  ;;  %v374_v45 = vpop.f32.mrf.mxu1 }
 0x109   :  { %948 = vmatprep.mubr.bf16.mxu0 %v390_v34  ;;  %988 = vmatprep.mubr.bf16.mxu1 %v392_v39  ;;  %v375_v20 = vadd.f32 %v374_v45, %v120_v14  ;;  %v334_v21 = vadd.f32 %v1520_v42, %v112_v16  ;;  %v1114_v39 = vld [vmem:[%s1538_s4] ss:$0 sm:$0xff]  ;;  %s1421_s4 = scalar_lea.vmem %s1084_s16, 128 }
 0x10a   :  { %949 = vmatmul.mubr.bf16.vlgmr.msra.gmra.mxu0 %v389_v38  ;;  %v335_v46 = vpop.f32.mrf.mxu0  ;;  %989 = vmatmul.mubr.bf16.vlgmr.msra.gmra.mxu1 %v391_v33  ;;  %v376_v49 = vpop.f32.mrf.mxu1  ;;  %p1422_p6 = scmp.ne.s32.totalorder %s1084_s16, %s1421_s4  ;;  %p1427_p8 = scmp.lt.s32.totalorder %s1421_s4, %s1421_s4 }
 0x10b   :  { %1224 = vmatpush3.bf16.msra.mxu0 %v1311_v36  ;;  %v336_v48 = vadd.f32 %v335_v46, %v116_v37  ;;  %1246 = vmatpush3.bf16.msra.mxu1 %v1312_v40  ;;  %v377_v53 = vadd.f32 %v376_v49, %v124_v43  ;;  %v387_v25 = vmax.f32 %v375_v20, 0.0  ;;  %v385_v26 = vmax.f32 %v334_v21, 0.0 }
 0x10c   :  { %1225 = vmatprep.subr.bf16.mxu0 %v1313_v41  ;;  %v337_v52 = vpop.f32.mrf.mxu0  ;;  %1247 = vmatprep.subr.bf16.mxu1 %v1314_v44  ;;  %v378_v56 = vpop.f32.mrf.mxu1  ;;  %p1428_p9 = por %p1427_p8, %p1426_p7 }
 0x10d   :  { %v386_v55 = vmax.f32 %v336_v48, 0.0  ;;  %v388_v57 = vmax.f32 %v377_v53, 0.0  ;;  %v395_v28 = vpack.c.bf16 %v387_v25, %v387_v25  ;;  %v393_v29 = vpack.c.bf16 %v385_v26, %v385_v26 }
 0x10e   :  { %v338_v58 = vpop.f32.mrf.mxu0  ;;  %v379_v61 = vpop.f32.mrf.mxu1  ;;  %p1429_p10 = pnand %p1428_p9, %p1422_p6 }
 0x10f   :  { %1226 = vmatpush3.bf16.msra.mxu0 %v1315_v47  ;;  %v394_v60 = vpack.c.bf16 %v386_v55, %v386_v55  ;;  %1248 = vmatpush3.bf16.msra.mxu1 %v1316_v50  ;;  %v396_v0 = vpack.c.bf16 %v388_v57, %v388_v57 }
 0x110   :  { %1227 = vmatprep.subr.bf16.mxu0 %v1317_v51  ;;  %1249 = vmatprep.subr.bf16.mxu1 %v1318_v54 }
 0x111   :  { %1028 = vmatprep.mubr.bf16.mxu0 %v394_v60  ;;  %1068 = vmatprep.mubr.bf16.mxu1 %v396_v0 }
 0x113   :  { %1228 = vmatpush3.bf16.msra.mxu0 %v1319_v59  ;;  %1250 = vmatpush3.bf16.msra.mxu1 %v1320_v62 }
 0x114   :  { %1229 = vmatprep.subr.bf16.mxu0 %v1321_v63  ;;  %1251 = vmatprep.subr.bf16.mxu1 %v1322_v1 }
 0x117   :  { %1230 = vmatpush3.bf16.msra.mxu0 %v1323_v2  ;;  %1252 = vmatpush3.bf16.msra.mxu1 %v1324_v3 }
 0x118   :  { %1231 = vmatprep.subr.bf16.mxu0 %v1325_v4  ;;  %1253 = vmatprep.subr.bf16.mxu1 %v1326_v5 }
 0x11b   :  { %1232 = vmatpush3.bf16.msra.mxu0 %v1327_v7  ;;  %1254 = vmatpush3.bf16.msra.mxu1 %v1328_v11 }
 0x11c   :  { %1233 = vmatprep.subr.bf16.mxu0 %v1329_v12  ;;  %1255 = vmatprep.subr.bf16.mxu1 %v1330_v13 }
 0x11f   :  { %1234 = vmatpush3.bf16.msra.mxu0 %v1331_v15  ;;  %1256 = vmatpush3.bf16.msra.mxu1 %v1332_v17 }
 0x120   :  { %1235 = vmatprep.subr.bf16.mxu0 %v1333_v18  ;;  %1257 = vmatprep.subr.bf16.mxu1 %v1334_v19 }
 0x123   :  { %1236 = vmatpush3.bf16.msra.mxu0 %v1335_v6  ;;  %1258 = vmatpush3.bf16.msra.mxu1 %v1336_v22 }
 0x124   :  { %1237 = vmatprep.subr.bf16.mxu0 %v1337_v23  ;;  %1259 = vmatprep.subr.bf16.mxu1 %v1338_v24 }
 0x127   :  { %1238 = vmatpush3.bf16.msra.mxu0 %v1339_v8  ;;  %1260 = vmatpush3.bf16.msra.mxu1 %v1340_v27 }
 0x12a   :  { %1029 = vmatmul.mubr.bf16.vlgmr.msra.gmra.mxu0 %v393_v29  ;;  %1069 = vmatmul.mubr.bf16.vlgmr.msra.gmra.mxu1 %v395_v28 }
 0x1ca   :  { %v1195_v30 = vpop.f32.mrf.mxu0  ;;  %v1217_v31 = vpop.f32.mrf.mxu1 }
 0x1cc   :  { %v1196_v32 = vpop.f32.mrf.mxu0  ;;  %v1218_v33 = vpop.f32.mrf.mxu1 }
 0x1cd   :  { %v1197_v38 = vadd.f32 %v1196_v32, %v1195_v30  ;;  %v1219_v42 = vadd.f32 %v1218_v33, %v1217_v31 }
 0x1ce   :  { %v1198_v34 = vpop.f32.mrf.mxu0  ;;  %v1220_v35 = vpop.f32.mrf.mxu1 }
 0x1cf   :  { %v951_v40 = vadd.f32 %v1197_v38, %v1114_v39 }
 0x1d0   :  { %v1199_v36 = vpop.f32.mrf.mxu0  ;;  %v1221_v37 = vpop.f32.mrf.mxu1 }
 0x1d1   :  { %v991_v45 = vadd.f32 %v1219_v42, %v951_v40 }
 0x1ea   :  { %v1239_v41 = vpop.f32.mrf.mxu0  ;;  %v1261_v43 = vpop.f32.mrf.mxu1 }
 0x1ec   :  { %v1240_v44 = vpop.f32.mrf.mxu0  ;;  %v1262_v47 = vpop.f32.mrf.mxu1 }
 0x1ed   :  { %v1241_v46 = vadd.f32 %v1240_v44, %v1239_v41  ;;  %v1263_v50 = vadd.f32 %v1262_v47, %v1261_v43 }
 0x1ee   :  { %v1242_v48 = vpop.f32.mrf.mxu0  ;;  %v1264_v51 = vpop.f32.mrf.mxu1 }
 0x1ef   :  { %v1031_v49 = vadd.f32 %v1241_v46, %v991_v45 }
 0x1f0   :  { %v1243_v52 = vpop.f32.mrf.mxu0  ;;  %v1265_v54 = vpop.f32.mrf.mxu1 }
 0x1f1   :  { %v1071_v53 = vadd.f32 %v1263_v50, %v1031_v49 }
 0x1f3   :  { %1076 = vst [vmem:[#allocation10] sm:$0xff] %v1071_v53 }
 0x1f4   :  { %1432 = shalt.err (!%p1429_p10)
}
 0x1f5   :  { %1086 = dma.vmem_to_hbm [thread:$0]  %s1084_s16, 128, %s1539_s5, [#allocation4]  }
 0x1f6   :  { %1447 = dma.done.wait [#allocation4], 128  }
 0x1f7   :  { %1448 = vsyncadd [#allocation4], 4294967168 }
 0x1f8   :  { %1090 = vsyncpa [#allocation3], 1 }
 0x1f9   :  { %1091 = vsyncpa [#allocation6], 1 }
 0x1fa   :  { %1092 = vsyncpa [#allocation9], 1 }
 0x1fb   :  { %1093 = vsyncpa [#allocation4], 1 }

</bundles_post_ra>
